<compile_context>
chip_gen: v5e
topology: v5e:2x2
jax: 0.10.0
libtpu: 0.0.40
codegen_flags: <defaults>
</compile_context>

<pallas_src>
import numpy as np

import jax
import jax.numpy as jnp
from jax.experimental import pallas as pl
from jax.experimental.pallas import tpu as pltpu


# --------------------------------------------------------------------------
# Pallas kernel: one Up stage (1x1 conv + bilinear x2) for one batch element.
# --------------------------------------------------------------------------
def _up_kernel(x_ref, l_ref, rxt_ref, b_ref, o_ref):
    # x_ref  : (1, C_in*H, W)       input slab, rows = (channel, row), lanes = W
    # l_ref  : (C_out*Ho, C_in*H)   kron(conv_w, Ry): fused 1x1 conv + row interp
    # rxt_ref: (W, Wo)              column interpolation matrix (transposed)
    # b_ref  : (C_out*Ho, 1)        conv bias repeated per output row
    # o_ref  : (1, C_out*Ho, Wo)    output slab (reshaped to NCHW in the wrapper)
    t = jnp.dot(l_ref[...], x_ref[0], preferred_element_type=jnp.float32)  # (C_out*Ho, W)
    o = jnp.dot(t, rxt_ref[...], preferred_element_type=jnp.float32) + b_ref[...]
    o_ref[0] = o.astype(o_ref.dtype)


# --------------------------------------------------------------------------
# Glue: interpolation matrices + per-stage pallas_call
# --------------------------------------------------------------------------
def _interp_matrix_align_corners(n_in, n_out):
    """Row-stochastic (n_out, n_in) matrix M so that M @ v is 1-D linear
    interpolation of v at PyTorch Upsample(mode='bilinear', align_corners=True)
    sample positions."""
    m = np.zeros((n_out, n_in), np.float32)
    if n_in == 1:
        m[:, 0] = 1.0
        return m
    s = np.arange(n_out, dtype=np.float64) * (n_in - 1) / (n_out - 1)
    lo = np.clip(np.floor(s).astype(np.int64), 0, n_in - 1)
    hi = np.minimum(lo + 1, n_in - 1)
    f = (s - lo).astype(np.float32)
    rows = np.arange(n_out)
    np.add.at(m, (rows, lo), 1.0 - f)
    np.add.at(m, (rows, hi), f)
    return m


def up_stage(x, w, b):
    """One Up block: Conv2d(C_in, C_out, 1, bias=True) followed by
    bilinear x2 upsampling with align_corners=True."""
    B, C_in, H, W = x.shape
    C_out = w.shape[0]
    Ho, Wo = 2 * H, 2 * W

    ry = _interp_matrix_align_corners(H, Ho)                      # (Ho, H)
    rx = _interp_matrix_align_corners(W, Wo)                      # (Wo, W)
    # Fused left operator: channel mixing (x) row interpolation.
    lmat = jnp.kron(w.astype(jnp.float32), jnp.asarray(ry))       # (C_out*Ho, C_in*H)
    rxt = jnp.asarray(rx).T                                       # (W, Wo)
    # Interp rows sum to 1, so adding the conv bias after upsampling is exact.
    b_rows = jnp.repeat(b.astype(jnp.float32), Ho).reshape(C_out * Ho, 1)

    x2 = x.reshape(B, C_in * H, W)                                # free (row-major)

    out2 = pl.pallas_call(
        _up_kernel,
        out_shape=jax.ShapeDtypeStruct((B, C_out * Ho, Wo), x.dtype),
        grid_spec=pltpu.PrefetchScalarGridSpec(
            num_scalar_prefetch=0,
            grid=(B,),
            in_specs=[
                pl.BlockSpec((1, C_in * H, W), lambda bi: (bi, 0, 0)),
                pl.BlockSpec((C_out * Ho, C_in * H), lambda bi: (0, 0)),
                pl.BlockSpec((W, Wo), lambda bi: (0, 0)),
                pl.BlockSpec((C_out * Ho, 1), lambda bi: (0, 0)),
            ],
            out_specs=pl.BlockSpec((1, C_out * Ho, Wo), lambda bi: (bi, 0, 0)),
        ),
        compiler_params=pltpu.CompilerParams(
            dimension_semantics=("parallel",)),  # v7x: shard batch across both TCs
    )(x2, lmat, rxt, b_rows)

    return out2.reshape(B, C_out, Ho, Wo)


def upsample_forward(x, ws, bs):
    """UpSample.forward: apply each Up stage in sequence."""
    for w, b in zip(ws, bs):
        x = up_stage(x, w, b)
    return x


# --------------------------------------------------------------------------
# Pure-JAX reference (independent code path: einsum conv + gather bilinear)
# --------------------------------------------------------------------------
def _bilinear_up2_align_corners_ref(x):
    B, C, H, W = x.shape
    Ho, Wo = 2 * H, 2 * W
    sy = jnp.arange(Ho, dtype=jnp.float32) * (H - 1) / (Ho - 1)
    sx = jnp.arange(Wo, dtype=jnp.float32) * (W - 1) / (Wo - 1)
    y0 = jnp.clip(jnp.floor(sy).astype(jnp.int32), 0, H - 1)
    x0 = jnp.clip(jnp.floor(sx).astype(jnp.int32), 0, W - 1)
    y1 = jnp.minimum(y0 + 1, H - 1)
    x1 = jnp.minimum(x0 + 1, W - 1)
    fy = (sy - y0.astype(jnp.float32))[None, None, :, None]
    fx = (sx - x0.astype(jnp.float32))[None, None, None, :]
    g = lambda yi, xi: x[:, :, yi, :][:, :, :, xi]
    return ((1 - fy) * (1 - fx) * g(y0, x0) + (1 - fy) * fx * g(y0, x1)
            + fy * (1 - fx) * g(y1, x0) + fy * fx * g(y1, x1))


def upsample_reference(x, ws, bs):
    for w, b in zip(ws, bs):
        x = jnp.einsum("oi,bihw->bohw", w, x,
                       precision=jax.lax.Precision.HIGHEST) + b[None, :, None, None]
        x = _bilinear_up2_align_corners_ref(x)
    return x


# --------------------------------------------------------------------------
if __name__ == "__main__":
    B, C0, H0, W0 = 2, 8, 16, 16
    scale_factor = 4          # -> 2 Up stages: 8ch/16px -> 4ch/32px -> 2ch/64px
    chan_factor = 2
    n_stages = int(np.log2(scale_factor))

    key = jax.random.PRNGKey(0)
    keys = jax.random.split(key, 1 + 2 * n_stages)
    x = jax.random.normal(keys[0], (B, C0, H0, W0), jnp.float32)

    # Per-stage Conv2d(C, C//chan_factor, 1) parameters (weight stored as (C_out, C_in),
    # i.e. the PyTorch (C_out, C_in, 1, 1) weight squeezed).
    ws, bs = [], []
    c = C0
    for s in range(n_stages):
        c_out = c // chan_factor
        w = jax.random.normal(keys[1 + 2 * s], (c_out, c), jnp.float32) / np.sqrt(c)
        b = jax.random.normal(keys[2 + 2 * s], (c_out,), jnp.float32) * 0.1
        ws.append(w)
        bs.append(b)
        c = c_out

    out = upsample_forward(x, ws, bs)
    out = jax.block_until_ready(out)

    ref = upsample_reference(x, ws, bs)
    expected_shape = (B, C0 // (chan_factor ** n_stages),
                      H0 * scale_factor, W0 * scale_factor)
    assert out.shape == expected_shape, (out.shape, expected_shape)
    max_err = float(jnp.max(jnp.abs(out - ref)))
    assert max_err < 2e-3, f"mismatch vs reference: max abs err = {max_err}"
    print("KERNEL_OK")
</pallas_src>

<mosaic_0001>
module attributes {stable_mosaic.version = 11 : i64} {
  func.func @_up_kernel(%arg0: i32, %arg1: memref<1x128x16xf32, #tpu.memory_space<vmem>>, %arg2: memref<128x128xf32, #tpu.memory_space<vmem>>, %arg3: memref<16x32xf32, #tpu.memory_space<vmem>>, %arg4: memref<128x1xf32, #tpu.memory_space<vmem>>, %arg5: memref<1x128x32xf32, #tpu.memory_space<vmem>>) attributes {dimension_semantics = [#tpu.dimension_semantics<parallel>], iteration_bounds = array<i64: 2>, scalar_prefetch = 0 : i64, scratch_operands = 0 : i64, tpu.core_type = #tpu.core_type<tc>, window_params = [{transform_indices = @transform_0, window_bounds = array<i64: 1, 128, 16>}, {pipeline_mode = #tpu.pipeline_mode<synchronous>, transform_indices = @transform_1, window_bounds = array<i64: 128, 128>}, {pipeline_mode = #tpu.pipeline_mode<synchronous>, transform_indices = @transform_2, window_bounds = array<i64: 16, 32>}, {pipeline_mode = #tpu.pipeline_mode<synchronous>, transform_indices = @transform_3, window_bounds = array<i64: 128, 1>}, {transform_indices = @transform_4, window_bounds = array<i64: 1, 128, 32>}]} {
    %c0 = arith.constant 0 : index
    %c0_0 = arith.constant 0 : index
    %0 = vector.load %arg2[%c0, %c0_0] : memref<128x128xf32, #tpu.memory_space<vmem>>, vector<128x128xf32>
    %c0_1 = arith.constant 0 : index
    %c0_2 = arith.constant 0 : index
    %c0_3 = arith.constant 0 : index
    %1 = vector.load %arg1[%c0_1, %c0_2, %c0_3] : memref<1x128x16xf32, #tpu.memory_space<vmem>>, vector<1x128x16xf32>
    %2 = vector.shape_cast %1 : vector<1x128x16xf32> to vector<128x16xf32>
    %cst = arith.constant dense<0.000000e+00> : vector<128x16xf32>
    %3 = tpu.matmul %0, %2, %cst {dimension_numbers = #tpu.dot_dimension_numbers<[1], [0], [0], [1], [0, 0, 1, 1], [], []>} : vector<128x128xf32>, vector<128x16xf32>, vector<128x16xf32> -> vector<128x16xf32>
    %c0_4 = arith.constant 0 : index
    %c0_5 = arith.constant 0 : index
    %4 = vector.load %arg3[%c0_4, %c0_5] : memref<16x32xf32, #tpu.memory_space<vmem>>, vector<16x32xf32>
    %cst_6 = arith.constant dense<0.000000e+00> : vector<128x32xf32>
    %5 = tpu.matmul %3, %4, %cst_6 {dimension_numbers = #tpu.dot_dimension_numbers<[1], [0], [0], [1], [0, 0, 1, 1], [], []>} : vector<128x16xf32>, vector<16x32xf32>, vector<128x32xf32> -> vector<128x32xf32>
    %c0_7 = arith.constant 0 : index
    %c0_8 = arith.constant 0 : index
    %6 = vector.load %arg4[%c0_7, %c0_8] : memref<128x1xf32, #tpu.memory_space<vmem>>, vector<128x1xf32>
    %7 = vector.broadcast %6 : vector<128x1xf32> to vector<128x32xf32>
    %8 = arith.addf %5, %7 : vector<128x32xf32>
    %c0_9 = arith.constant 0 : index
    %c0_10 = arith.constant 0 : index
    %c0_11 = arith.constant 0 : index
    %9 = vector.load %arg5[%c0_9, %c0_10, %c0_11] : memref<1x128x32xf32, #tpu.memory_space<vmem>>, vector<1x128x32xf32>
    %10 = vector.shape_cast %9 : vector<1x128x32xf32> to vector<128x32xf32>
    %11 = vector.shape_cast %8 : vector<128x32xf32> to vector<1x128x32xf32>
    tpu.vector_store %arg5[%c0_9, %c0_10, %c0_11], %11 {strides = array<i32>} : memref<1x128x32xf32, #tpu.memory_space<vmem>>, vector<1x128x32xf32>,
    return
  }
  func.func @transform_0(%arg0: i32) -> (i32, i32, i32) {
    %c0_i32 = arith.constant 0 : i32
    %c0_i32_0 = arith.constant 0 : i32
    %c0_i32_1 = arith.constant 0 : i32
    return %arg0, %c0_i32, %c0_i32_0 : i32, i32, i32
  }
  func.func @transform_1(%arg0: i32) -> (i32, i32) {
    %c0_i32 = arith.constant 0 : i32
    %c0_i32_0 = arith.constant 0 : i32
    %c0_i32_1 = arith.constant 0 : i32
    return %c0_i32, %c0_i32_0 : i32, i32
  }
  func.func @transform_2(%arg0: i32) -> (i32, i32) {
    %c0_i32 = arith.constant 0 : i32
    %c0_i32_0 = arith.constant 0 : i32
    %c0_i32_1 = arith.constant 0 : i32
    return %c0_i32, %c0_i32_0 : i32, i32
  }
  func.func @transform_3(%arg0: i32) -> (i32, i32) {
    %c0_i32 = arith.constant 0 : i32
    %c0_i32_0 = arith.constant 0 : i32
    %c0_i32_1 = arith.constant 0 : i32
    return %c0_i32, %c0_i32_0 : i32, i32
  }
  func.func @transform_4(%arg0: i32) -> (i32, i32, i32) {
    %c0_i32 = arith.constant 0 : i32
    %c0_i32_0 = arith.constant 0 : i32
    %c0_i32_1 = arith.constant 0 : i32
    return %arg0, %c0_i32, %c0_i32_0 : i32, i32, i32
  }
}

</mosaic_0001>

<bundles_post_ra>
// kernel: tpu_custom_call.1
= control target key start
LH: loop header
LB: loop body
LE: loop exit
PB: predicated region body
PF: predicated region fallthrough
CT: control target
= control target key end

     0   :  { %s688_s15 = smov 0   ;;  %s882_s0 = inlined_call_operand.vmem [shape: f32[2,128,16], index: 0, kind: input, shape index: {}]   ;;  %s883_s1 = inlined_call_operand.vmem [shape: f32[128,128], index: 1, kind: input, shape index: {}]   ;;  %s884_s2 = inlined_call_operand.vmem [shape: f32[16,32], index: 2, kind: input, shape index: {}]   ;;  %s885_s3 = inlined_call_operand.vmem [shape: f32[128,1], index: 3, kind: input, shape index: {}]   ;;  %s886_s4 = inlined_call_operand.vmem [shape: f32[2,128,32], index: 4, kind: output, shape index: {}]  }
   0x1 LB: > { %s579_s16 = sadd.s32 4294967295, %s660_s15   ;;  %p583_p0 = scmp.ge.s32.totalorder %s660_s15, 1  ;;  %s660_s15 = sphi %s688_s15, %s14_s15  }
   0x2   : > { %p162_p1 = scmp.lt.s32.totalorder %s660_s15, 3 }
   0x4   : > { %p163_p2 = pnand %p583_p0, %p162_p1 }
   0x5   : > { %p188_p3 = scmp.lt.s32.totalorder (!%p163_p2), %s579_s16, 1 }
   0x6   : > { %166 = sbr.rel (%p163_p2) target bundleno = 377 (0x179), region = 36 }
   0xb   : > { %s888_s16 = smov (!%p188_p3, %s579_s16), 1  ;;  %v198_v16 = vld [vmem:[%s883_s1] sm:$0xff]  ;;  %v205_v17 = vld [vmem:[%s883_s1 + $0x38] sm:$0xff]  ;;  %v199_v18 = vld [vmem:[%s883_s1 + $0x8] sm:$0xff]  ;;  %v662_v35 = vmov 0   ;;  %vm393_vm0 = vcmask 130048  }
   0xc   : > { %s606_s17 = sshll.u32 %s888_s16, 7  ;;  %v206_v19 = vld [vmem:[%s883_s1 + $0x40] sm:$0xff]  ;;  %v200_v20 = vld [vmem:[%s883_s1 + $0x10] sm:$0xff]  ;;  %v207_v21 = vld [vmem:[%s883_s1 + $0x48] sm:$0xff]  ;;  %651 = vset.pattern.permute.xlu0 %v662_v35  ;;  %652 = vset.pattern.permute.xlu1 %v662_v35  ;;  %vm507_vm1 = vcmask 261120  }
   0xd   : > { %s704_s20 = scalar_lea.vmem %s882_s0, %s606_s17  ;;  %v201_v22 = vld [vmem:[%s883_s1 + $0x18] sm:$0xff]  ;;  %v208_v23 = vld [vmem:[%s883_s1 + $0x50] sm:$0xff]  ;;  %v296_v25 = vld [vmem:[%s884_s2 + $0x8] sm:$0xff]  ;;  %653 = vset.pattern.permute.xlu2 %v662_v35  ;;  %s845_s22 = scalar_lea.vmem %s886_s4, %s606_s17 }
   0xe   : > { %v229_v0 = vld [vmem:[%s704_s20 + $0x78] sm:$0xff]  ;;  %v228_v1 = vld [vmem:[%s704_s20 + $0x70] sm:$0xff]  ;;  %v227_v2 = vld [vmem:[%s704_s20 + $0x68] sm:$0xff]  ;;  %456 = vmatpush.msra.mxu1 %v296_v25 }
   0xf   : > { %230 = vmatpush.msra.mxu0 %v229_v0  ;;  %608 = vmatpush.msra.mxu2 %v229_v0  ;;  %v226_v3 = vld [vmem:[%s704_s20 + $0x60] sm:$0xff]  ;;  %v225_v4 = vld [vmem:[%s704_s20 + $0x58] sm:$0xff]  ;;  %v224_v5 = vld [vmem:[%s704_s20 + $0x50] sm:$0xff] }
  0x10   : > { %609 = vmatpush.msra.mxu3 %v229_v0  ;;  %v223_v6 = vld [vmem:[%s704_s20 + $0x48] sm:$0xff]  ;;  %v222_v7 = vld [vmem:[%s704_s20 + $0x40] sm:$0xff]  ;;  %v221_v8 = vld [vmem:[%s704_s20 + $0x38] sm:$0xff] }
  0x11   : > { %231 = vmatpush.msra.mxu0 %v228_v1  ;;  %610 = vmatpush.msra.mxu2 %v228_v1  ;;  %v220_v9 = vld [vmem:[%s704_s20 + $0x30] sm:$0xff]  ;;  %v219_v10 = vld [vmem:[%s704_s20 + $0x28] sm:$0xff]  ;;  %v218_v11 = vld [vmem:[%s704_s20 + $0x20] sm:$0xff] }
  0x12   : > { %611 = vmatpush.msra.mxu3 %v228_v1  ;;  %v217_v12 = vld [vmem:[%s704_s20 + $0x18] sm:$0xff]  ;;  %v216_v13 = vld [vmem:[%s704_s20 + $0x10] sm:$0xff]  ;;  %v215_v14 = vld [vmem:[%s704_s20 + $0x8] sm:$0xff] }
  0x13   : > { %232 = vmatpush.msra.mxu0 %v227_v2  ;;  %612 = vmatpush.msra.mxu2 %v227_v2  ;;  %v214_v15 = vld [vmem:[%s704_s20] sm:$0xff]  ;;  %v213_v24 = vld [vmem:[%s883_s1 + $0x78] sm:$0xff]  ;;  %v203_v28 = vld [vmem:[%s883_s1 + $0x28] sm:$0xff] }
  0x14   : > { %613 = vmatpush.msra.mxu3 %v227_v2  ;;  %v202_v26 = vld [vmem:[%s883_s1 + $0x20] sm:$0xff]  ;;  %v209_v27 = vld [vmem:[%s883_s1 + $0x58] sm:$0xff]  ;;  %v204_v30 = vld [vmem:[%s883_s1 + $0x30] sm:$0xff] }
  0x15   : > { %233 = vmatpush.msra.mxu0 %v226_v3  ;;  %614 = vmatpush.msra.mxu2 %v226_v3  ;;  %v210_v29 = vld [vmem:[%s883_s1 + $0x60] sm:$0xff]  ;;  %v211_v31 = vld [vmem:[%s883_s1 + $0x68] sm:$0xff]  ;;  %v212_v32 = vld [vmem:[%s883_s1 + $0x70] sm:$0xff] }
  0x16   : > { %615 = vmatpush.msra.mxu3 %v226_v3  ;;  %v295_v33 = vld [vmem:[%s884_s2] sm:$0xff]  ;;  %v298_v36 = vld [vmem:[%s885_s3 + $0x8] sm:$0xff]  ;;  %v299_v37 = vld [vmem:[%s885_s3 + $0x10] sm:$0xff] }
  0x17   : > { %234 = vmatpush.msra.mxu0 %v225_v4  ;;  %616 = vmatpush.msra.mxu2 %v225_v4  ;;  %v297_v34 = vld [vmem:[%s885_s3] sm:$0xff]  ;;  %v303_v38 = vld [vmem:[%s885_s3 + $0x30] sm:$0xff]  ;;  %v300_v39 = vld [vmem:[%s885_s3 + $0x18] sm:$0xff] }
  0x18   : > { %617 = vmatpush.msra.mxu3 %v225_v4  ;;  %457 = vmatpush.msra.mxu1 %v295_v33  ;;  %v306_v40 = vld [vmem:[%s885_s3 + $0x48] sm:$0xff]  ;;  %v304_v43 = vld [vmem:[%s885_s3 + $0x38] sm:$0xff]  ;;  %v309_v44 = vld [vmem:[%s885_s3 + $0x60] sm:$0xff] }
  0x19   : > { %235 = vmatpush.msra.mxu0 %v224_v5  ;;  %618 = vmatpush.msra.mxu2 %v224_v5  ;;  %v301_v47 = vld [vmem:[%s885_s3 + $0x20] sm:$0xff]  ;;  %v307_v48 = vld [vmem:[%s885_s3 + $0x50] sm:$0xff]  ;;  %v312_v49 = vld [vmem:[%s885_s3 + $0x78] sm:$0xff] }
  0x1a   : > { %619 = vmatpush.msra.mxu3 %v224_v5  ;;  %315 = vperm.xlu0 %651, %v297_v34   ;;  %v302_v52 = vld [vmem:[%s885_s3 + $0x28] sm:$0xff]  ;;  %v305_v56 = vld [vmem:[%s885_s3 + $0x40] sm:$0xff]  ;;  %v308_v59 = vld [vmem:[%s885_s3 + $0x58] sm:$0xff] }
  0x1b   : > { %236 = vmatpush.msra.mxu0 %v223_v6  ;;  %620 = vmatpush.msra.mxu2 %v223_v6  ;;  %v310_v53 = vld [vmem:[%s885_s3 + $0x68] sm:$0xff]  ;;  %v311_v61 = vld [vmem:[%s885_s3 + $0x70] sm:$0xff] }
  0x1c   : > { %621 = vmatpush.msra.mxu3 %v223_v6  ;;  %325 = vperm.xlu1 %652, %v299_v37  }
  0x1d   : > { %237 = vmatpush.msra.mxu0 %v222_v7  ;;  %622 = vmatpush.msra.mxu2 %v222_v7 }
  0x1e   : > { %623 = vmatpush.msra.mxu3 %v222_v7  ;;  %335 = vperm.xlu2 %653, %v301_v47  }
  0x1f   : > { %238 = vmatpush.msra.mxu0 %v221_v8  ;;  %624 = vmatpush.msra.mxu2 %v221_v8 }
  0x20   : > { %625 = vmatpush.msra.mxu3 %v221_v8 }
  0x21   : > { %239 = vmatpush.msra.mxu0 %v220_v9  ;;  %626 = vmatpush.msra.mxu2 %v220_v9 }
  0x22   : > { %627 = vmatpush.msra.mxu3 %v220_v9  ;;  %320 = vperm.xlu0 %651, %v298_v36  }
  0x23   : > { %240 = vmatpush.msra.mxu0 %v219_v10  ;;  %628 = vmatpush.msra.mxu2 %v219_v10 }
  0x24   : > { %629 = vmatpush.msra.mxu3 %v219_v10  ;;  %330 = vperm.xlu1 %652, %v300_v39  }
  0x25   : > { %241 = vmatpush.msra.mxu0 %v218_v11  ;;  %630 = vmatpush.msra.mxu2 %v218_v11 }
  0x26   : > { %631 = vmatpush.msra.mxu3 %v218_v11  ;;  %340 = vperm.xlu2 %653, %v302_v52  }
  0x27   : > { %242 = vmatpush.msra.mxu0 %v217_v12  ;;  %632 = vmatpush.msra.mxu2 %v217_v12 }
  0x28   : > { %633 = vmatpush.msra.mxu3 %v217_v12 }
  0x29   : > { %243 = vmatpush.msra.mxu0 %v216_v13  ;;  %634 = vmatpush.msra.mxu2 %v216_v13 }
  0x2a   : > { %635 = vmatpush.msra.mxu3 %v216_v13  ;;  %345 = vperm.xlu0 %651, %v303_v38  }
  0x2b   : > { %244 = vmatpush.msra.mxu0 %v215_v14  ;;  %636 = vmatpush.msra.mxu2 %v215_v14 }
  0x2c   : > { %637 = vmatpush.msra.mxu3 %v215_v14  ;;  %350 = vperm.xlu1 %652, %v304_v43  }
  0x2d   : > { %245 = vmatpush.msra.mxu0 %v214_v15  ;;  %638 = vmatpush.msra.mxu2 %v214_v15 }
  0x2e   : > { %246 = vmatmul.f32.vlgmr.msra.gmra.mxu0 %v198_v16  ;;  %267 = vmatmul.f32.vlgmr.msra.gmra.mxu2 %v205_v17 }
  0x2f   : > { %639 = vmatpush.msra.mxu3 %v214_v15  ;;  %355 = vperm.xlu2 %653, %v305_v56  }
  0x30   : > { %291 = vmatmul.f32.vlgmr.msra.gmra.mxu3 %v213_v24 }
  0x31   : > { %640 = vmatpush.msrb.mxu3 %v296_v25 }
  0x32   : > { %360 = vperm.xlu0 %651, %v306_v40  }
  0x33   : > { %641 = vmatpush.msrb.mxu3 %v295_v33 }
  0x34   : > { %365 = vperm.xlu1 %652, %v307_v48  }
  0x36   : > { %249 = vmatmul.f32.gmra.mxu0 %v199_v18  ;;  %270 = vmatmul.f32.gmra.mxu2 %v206_v19 }
  0x37   : > { %370 = vperm.xlu2 %653, %v308_v59  }
  0x3a   : > { %375 = vperm.xlu0 %651, %v309_v44  }
  0x3c   : > { %380 = vperm.xlu1 %652, %v310_v53  }
  0x3e   : > { %252 = vmatmul.f32.gmra.mxu0 %v200_v20  ;;  %273 = vmatmul.f32.gmra.mxu2 %v207_v21 }
  0x3f   : > { %385 = vperm.xlu2 %653, %v311_v61  }
  0x42   : > { %390 = vperm.xlu0 %651, %v312_v49  }
  0x46   : > { %255 = vmatmul.f32.gmra.mxu0 %v201_v22  ;;  %276 = vmatmul.f32.gmra.mxu2 %v208_v23 }
  0x4e   : > { %258 = vmatmul.f32.gmra.mxu0 %v202_v26  ;;  %279 = vmatmul.f32.gmra.mxu2 %v209_v27 }
  0x56   : > { %261 = vmatmul.f32.gmra.mxu0 %v203_v28  ;;  %282 = vmatmul.f32.gmra.mxu2 %v210_v29 }
  0x5e   : > { %264 = vmatmul.f32.gmra.mxu0 %v204_v30  ;;  %285 = vmatmul.f32.gmra.mxu2 %v211_v31 }
  0x66   : > { %288 = vmatmul.f32.gmra.mxu2 %v212_v32 }
  0x78   : > { %v336_v10 = vpop.permute.xlu2 %335 }
  0x80   : > { %v341_v14 = vpop.permute.xlu2 %340 }
  0x89   : > { %v356_v21 = vpop.permute.xlu2 %355 }
  0x8c   : > { %v316_v3 = vpop.permute.xlu0 %315 }
  0x8e   : > { %v326_v6 = vpop.permute.xlu1 %325 }
  0x91   : > { %v371_v28 = vpop.permute.xlu2 %370 }
  0x94   : > { %v321_v7 = vpop.permute.xlu0 %320 }
  0x96   : > { %v331_v11 = vpop.permute.xlu1 %330 }
  0x99   : > { %v386_v43 = vpop.permute.xlu2 %385 }
  0x9c   : > { %v346_v18 = vpop.permute.xlu0 %345 }
  0x9e   : > { %v351_v16 = vpop.permute.xlu1 %350 }
  0xa4   : > { %v361_v27 = vpop.permute.xlu0 %360 }
  0xa6   : > { %v366_v22 = vpop.permute.xlu1 %365 }
  0xab   : > { %v247_v41 = vpop.f32.mrf.mxu0 }
  0xac   : > { %588 = vmatmul.msk.f32.vlgmr.msra.gmra.mxu1 %vm393_vm0, %v247_v41  ;;  %v376_v33 = vpop.permute.xlu0 %375 }
  0xae   : > { %v381_v38 = vpop.permute.xlu1 %380 }
  0xb1   : > { %v268_v42 = vpop.f32.mrf.mxu2 }
  0xb3   : > { %v250_v45 = vpop.f32.mrf.mxu0  ;;  %v292_v2 = vpop.f32.mrf.mxu3 }
  0xb4   : > { %589 = vmatmul.msk.f32.gmra.mxu1 %vm393_vm0, %v250_v45  ;;  %v391_v48 = vpop.permute.xlu0 %390 }
  0xb9   : > { %v271_v46 = vpop.f32.mrf.mxu2 }
  0xbb   : > { %v253_v50 = vpop.f32.mrf.mxu0 }
  0xbc   : > { %590 = vmatmul.msk.f32.gmra.mxu1 %vm393_vm0, %v253_v50 }
  0xc1   : > { %v274_v51 = vpop.f32.mrf.mxu2 }
  0xc3   : > { %v256_v54 = vpop.f32.mrf.mxu0 }
  0xc4   : > { %591 = vmatmul.msk.f32.gmra.mxu1 %vm393_vm0, %v256_v54 }
  0xc9   : > { %v277_v55 = vpop.f32.mrf.mxu2 }
  0xca   : > { %598 = vmatmul.msk.f32.vlgmr.msrb.gmra.mxu3 %vm393_vm0, %v277_v55 }
  0xcb   : > { %v259_v57 = vpop.f32.mrf.mxu0 }
  0xcc   : > { %592 = vmatmul.msk.f32.gmra.mxu1 %vm393_vm0, %v259_v57 }
  0xd1   : > { %v280_v58 = vpop.f32.mrf.mxu2 }
  0xd2   : > { %599 = vmatmul.msk.f32.gmra.mxu3 %vm393_vm0, %v280_v58 }
  0xd3   : > { %v262_v60 = vpop.f32.mrf.mxu0 }
  0xd4   : > { %593 = vmatmul.msk.f32.gmra.mxu1 %vm393_vm0, %v262_v60 }
  0xd9   : > { %v283_v62 = vpop.f32.mrf.mxu2 }
  0xda   : > { %600 = vmatmul.msk.f32.gmra.mxu3 %vm393_vm0, %v283_v62 }
  0xdb   : > { %v265_v63 = vpop.f32.mrf.mxu0 }
  0xdc   : > { %594 = vmatmul.msk.f32.gmra.mxu1 %vm393_vm0, %v265_v63 }
  0xe1   : > { %v286_v0 = vpop.f32.mrf.mxu2 }
  0xe2   : > { %601 = vmatmul.msk.f32.gmra.mxu3 %vm393_vm0, %v286_v0 }
  0xe4   : > { %595 = vmatmul.msk.f32.gmra.mxu1 %vm393_vm0, %v268_v42 }
  0xe9   : > { %v289_v1 = vpop.f32.mrf.mxu2 }
  0xea   : > { %602 = vmatmul.msk.f32.gmra.mxu3 %vm393_vm0, %v289_v1 }
  0xec   : > { %596 = vmatmul.msk.f32.gmra.mxu1 %vm393_vm0, %v271_v46 }
  0xf2   : > { %603 = vmatmul.msk.f32.gmra.mxu3 %vm393_vm0, %v292_v2 }
  0xf4   : > { %597 = vmatmul.msk.f32.gmra.mxu1 %vm393_vm0, %v274_v51 }
 0x129   : > { %v459_v4 = vpop.f32.mrf.mxu1 }
 0x12a   : > { %v460_v5 = vadd.f32 %v459_v4, %v316_v3 }
 0x12c   : > { %508 = vst.msk [vmem:[%s845_s22] sm:$0xff] %vm507_vm1, %v460_v5 }
 0x131   : > { %v462_v8 = vpop.f32.mrf.mxu1 }
 0x132   : > { %v463_v9 = vadd.f32 %v462_v8, %v321_v7 }
 0x134   : > { %509 = vst.msk [vmem:[%s845_s22 + $0x8] sm:$0xff] %vm507_vm1, %v463_v9 }
 0x139   : > { %v465_v12 = vpop.f32.mrf.mxu1 }
 0x13a   : > { %v466_v13 = vadd.f32 %v465_v12, %v326_v6 }
 0x13c   : > { %510 = vst.msk [vmem:[%s845_s22 + $0x10] sm:$0xff] %vm507_vm1, %v466_v13 }
 0x141   : > { %v468_v15 = vpop.f32.mrf.mxu1 }
 0x142   : > { %v469_v17 = vadd.f32 %v468_v15, %v331_v11 }
 0x144   : > { %511 = vst.msk [vmem:[%s845_s22 + $0x18] sm:$0xff] %vm507_vm1, %v469_v17 }
 0x149   : > { %v471_v19 = vpop.f32.mrf.mxu1 }
 0x14a   : > { %v472_v20 = vadd.f32 %v471_v19, %v336_v10 }
 0x14c   : > { %512 = vst.msk [vmem:[%s845_s22 + $0x20] sm:$0xff] %vm507_vm1, %v472_v20 }
 0x14d   : > { %v489_v23 = vpop.f32.mrf.mxu3 }
 0x14e   : > { %v490_v24 = vadd.f32 %v489_v23, %v366_v22 }
 0x150   : > { %518 = vst.msk [vmem:[%s845_s22 + $0x50] sm:$0xff] %vm507_vm1, %v490_v24 }
 0x151   : > { %v474_v25 = vpop.f32.mrf.mxu1 }
 0x152   : > { %v475_v26 = vadd.f32 %v474_v25, %v341_v14 }
 0x154   : > { %513 = vst.msk [vmem:[%s845_s22 + $0x28] sm:$0xff] %vm507_vm1, %v475_v26 }
 0x155   : > { %v492_v29 = vpop.f32.mrf.mxu3 }
 0x156   : > { %v493_v30 = vadd.f32 %v492_v29, %v371_v28 }
 0x158   : > { %519 = vst.msk [vmem:[%s845_s22 + $0x58] sm:$0xff] %vm507_vm1, %v493_v30 }
 0x159   : > { %v477_v31 = vpop.f32.mrf.mxu1 }
 0x15a   : > { %v478_v32 = vadd.f32 %v477_v31, %v346_v18 }
 0x15c   : > { %514 = vst.msk [vmem:[%s845_s22 + $0x30] sm:$0xff] %vm507_vm1, %v478_v32 }
 0x15d   : > { %v495_v34 = vpop.f32.mrf.mxu3 }
 0x15e   : > { %v496_v35 = vadd.f32 %v495_v34, %v376_v33 }
 0x160   : > { %520 = vst.msk [vmem:[%s845_s22 + $0x60] sm:$0xff] %vm507_vm1, %v496_v35 }
 0x161   : > { %v480_v36 = vpop.f32.mrf.mxu1 }
 0x162   : > { %v481_v37 = vadd.f32 %v480_v36, %v351_v16 }
 0x164   : > { %515 = vst.msk [vmem:[%s845_s22 + $0x38] sm:$0xff] %vm507_vm1, %v481_v37 }
 0x165   : > { %v498_v39 = vpop.f32.mrf.mxu3 }
 0x166   : > { %v499_v40 = vadd.f32 %v498_v39, %v381_v38 }
 0x168   : > { %521 = vst.msk [vmem:[%s845_s22 + $0x68] sm:$0xff] %vm507_vm1, %v499_v40 }
 0x169   : > { %v483_v41 = vpop.f32.mrf.mxu1 }
 0x16a   : > { %v484_v42 = vadd.f32 %v483_v41, %v356_v21 }
 0x16c   : > { %516 = vst.msk [vmem:[%s845_s22 + $0x40] sm:$0xff] %vm507_vm1, %v484_v42 }
 0x16d   : > { %v501_v44 = vpop.f32.mrf.mxu3 }
 0x16e   : > { %v502_v45 = vadd.f32 %v501_v44, %v386_v43 }
 0x170   : > { %522 = vst.msk [vmem:[%s845_s22 + $0x70] sm:$0xff] %vm507_vm1, %v502_v45 }
 0x171   : > { %v486_v46 = vpop.f32.mrf.mxu1 }
 0x172   : > { %v487_v47 = vadd.f32 %v486_v46, %v361_v27 }
 0x174   : > { %517 = vst.msk [vmem:[%s845_s22 + $0x48] sm:$0xff] %vm507_vm1, %v487_v47 }
 0x175   : > { %v504_v49 = vpop.f32.mrf.mxu3 }
 0x176   : > { %v505_v50 = vadd.f32 %v504_v49, %v391_v48 }
 0x178   : > { %523 = vst.msk [vmem:[%s845_s22 + $0x78] sm:$0xff] %vm507_vm1, %v505_v50 }
 0x179 PF: > { %s14_s15 = sadd.s32 1, %s660_s15  }
 0x17a   : > { %p11_p4 = scmp.ge.s32.totalorder %s14_s15, 4  }
 0x17c   :  { %13 = sbr.rel (!%p11_p4) target bundleno = 1 (0x1), region = 66 }

</bundles_post_ra>
